<compile_context>
chip_gen: v7x
topology: tpu7x:2x2x1
jax: 0.10.0
libtpu: 0.0.40
codegen_flags: <defaults>
</compile_context>

<pallas_src>
import functools

import jax
import jax.numpy as jnp
from jax.experimental import pallas as pl
from jax.experimental.pallas import tpu as pltpu


def _ramp(current_or_e, *, max_epoch, ramp):
    """Ramp math shared by the jnp path and the Pallas kernel (elementwise)."""
    current = jnp.clip(current_or_e, 0.0, max_epoch)
    phase = 1.0 - current / max_epoch
    if ramp == "sigmoid":
        return jnp.exp(-5.0 * phase * phase)
    elif ramp == "log":
        return 1.0 - jnp.exp(-5.0 * current / max_epoch)
    elif ramp == "exp":
        return jnp.exp(5.0 * (current / max_epoch - 1.0))
    else:
        return jnp.ones_like(current)


def consistency_weight(epoch, *, max_weight, max_epoch, ramp="sigmoid"):
    """Module-equivalent forward (plain jnp — fused by XLA into consumers)."""
    assert float(max_epoch) > 0.0, "max_epoch must be > 0"
    e = jnp.asarray(epoch, dtype=jnp.float32)
    return max_weight * _ramp(e, max_epoch=float(max_epoch), ramp=ramp)


# ----------------------------------------------------------------------------
# Pallas kernel: ramp fused into a consumer weighting kernel.
# ----------------------------------------------------------------------------
def _weighted_loss_kernel(epoch_ref, loss_ref, wloss_ref, w_ref, *,
                          max_weight, max_epoch, ramp):
    # epoch comes in through SMEM (scalar path); splat once to a (1,1) tile so
    # the exp runs on the EUP and the few VPU ops are negligible filler.
    e = epoch_ref[0]
    e11 = jnp.full((1, 1), e, dtype=jnp.float32)
    w11 = max_weight * _ramp(e11, max_epoch=max_epoch, ramp=ramp)      # (1, 1) f32

    # Fused consumer: weight the loss tile (lane-dense output, unmasked stores).
    wloss_ref[...] = (w11 * loss_ref[...]).astype(wloss_ref.dtype)
    # Free byproduct of the same dispatch: the scalar consistency weight itself.
    w_ref[...] = w11.astype(w_ref.dtype)


def weighted_consistency_loss(loss, epoch, *, max_weight, max_epoch, ramp="sigmoid"):
    """Single Pallas dispatch: returns (max_weight*ramp(epoch) * loss, weight[1,1])."""
    assert float(max_epoch) > 0.0, "max_epoch must be > 0"
    epoch_arr = jnp.asarray(epoch, dtype=jnp.float32).reshape(1)
    kernel = functools.partial(
        _weighted_loss_kernel,
        max_weight=float(max_weight),
        max_epoch=float(max_epoch),
        ramp=ramp,
    )
    return pl.pallas_call(
        kernel,
        out_shape=(
            jax.ShapeDtypeStruct(loss.shape, loss.dtype),   # weighted loss
            jax.ShapeDtypeStruct((1, 1), jnp.float32),      # consistency weight
        ),
        in_specs=[
            pl.BlockSpec(memory_space=pltpu.SMEM),   # epoch: scalar path, no vector DMA
            pl.BlockSpec(memory_space=pltpu.VMEM),   # loss tile
        ],
        out_specs=(
            pl.BlockSpec(memory_space=pltpu.VMEM),
            pl.BlockSpec(memory_space=pltpu.VMEM),
        ),
    )(epoch_arr, loss)


if __name__ == "__main__":
    import numpy as np

    # Static module config (mirrors ConsistencyWeight(max_weight, max_epoch, ramp)).
    max_weight = 10.0
    max_epoch = 30.0

    key = jax.random.PRNGKey(0)
    k_epoch, k_loss = jax.random.split(key)
    epoch = jax.random.uniform(k_epoch, (), minval=0.0, maxval=40.0, dtype=jnp.float32)
    # Small lane-dense loss tile (sublane=8, lane=128) for the fused demo.
    loss = jax.random.uniform(k_loss, (8, 128), dtype=jnp.float32)
    loss_np = np.asarray(loss)

    for ramp in ("sigmoid", "log", "exp", "linear"):
        # Optimized module forward (plain jnp — no kernel launch).
        w = jax.block_until_ready(
            consistency_weight(epoch, max_weight=max_weight, max_epoch=max_epoch, ramp=ramp))

        # Fused-consumer Pallas kernel (ramp computed in-kernel from SMEM epoch).
        wloss, w_k = weighted_consistency_loss(
            loss, epoch, max_weight=max_weight, max_epoch=max_epoch, ramp=ramp)
        wloss = jax.block_until_ready(wloss)
        w_k = jax.block_until_ready(w_k)

        # Reference: exact PyTorch-module semantics in numpy.
        e = float(np.asarray(epoch))
        current = np.clip(e, 0.0, max_epoch)
        phase = 1.0 - current / max_epoch
        if ramp == "sigmoid":
            r = float(np.exp(-5.0 * phase * phase))
        elif ramp == "log":
            r = float(1.0 - np.exp(-5.0 * current / max_epoch))
        elif ramp == "exp":
            r = float(np.exp(5.0 * (current / max_epoch - 1.0)))
        else:
            r = 1.0
        ref_w = max_weight * r

        np.testing.assert_allclose(float(np.asarray(w)), ref_w, rtol=1e-4, atol=1e-5)
        np.testing.assert_allclose(float(np.asarray(w_k)[0, 0]), ref_w, rtol=1e-4, atol=1e-5)
        np.testing.assert_allclose(np.asarray(wloss), ref_w * loss_np, rtol=1e-4, atol=1e-5)

    print("KERNEL_OK")
</pallas_src>

<mosaic_0001>
module attributes {stable_mosaic.version = 11 : i64} {
  func.func @_weighted_loss_kernel(%arg0: memref<1xf32, #tpu.memory_space<smem>>, %arg1: memref<8x128xf32, #tpu.memory_space<vmem>>, %arg2: memref<8x128xf32, #tpu.memory_space<vmem>>, %arg3: memref<1x1xf32, #tpu.memory_space<vmem>>) attributes {dimension_semantics = [], scalar_prefetch = 0 : i64, scratch_operands = 0 : i64, tpu.core_type = #tpu.core_type<tc>} {
    %c0 = arith.constant 0 : index
    %0 = memref.load %arg0[%c0] : memref<1xf32, #tpu.memory_space<smem>>
    %1 = vector.broadcast %0 : f32 to vector<1x1xf32>
    %cst = arith.constant 0.000000e+00 : f32
    %cst_0 = arith.constant 3.000000e+01 : f32
    %2 = vector.broadcast %cst : f32 to vector<1x1xf32>
    %3 = arith.maximumf %2, %1 : vector<1x1xf32>
    %4 = vector.broadcast %cst_0 : f32 to vector<1x1xf32>
    %5 = arith.minimumf %4, %3 : vector<1x1xf32>
    %cst_1 = arith.constant 3.000000e+01 : f32
    %6 = vector.broadcast %cst_1 : f32 to vector<1x1xf32>
    %7 = arith.divf %5, %6 : vector<1x1xf32>
    %cst_2 = arith.constant 1.000000e+00 : f32
    %8 = vector.broadcast %cst_2 : f32 to vector<1x1xf32>
    %9 = arith.subf %8, %7 : vector<1x1xf32>
    %cst_3 = arith.constant -5.000000e+00 : f32
    %10 = vector.broadcast %cst_3 : f32 to vector<1x1xf32>
    %11 = arith.mulf %10, %9 : vector<1x1xf32>
    %12 = arith.mulf %11, %9 : vector<1x1xf32>
    %13 = math.exp %12 : vector<1x1xf32>
    %cst_4 = arith.constant 1.000000e+01 : f32
    %14 = vector.broadcast %cst_4 : f32 to vector<1x1xf32>
    %15 = arith.mulf %14, %13 : vector<1x1xf32>
    %c0_5 = arith.constant 0 : index
    %c0_6 = arith.constant 0 : index
    %16 = vector.load %arg1[%c0_5, %c0_6] : memref<8x128xf32, #tpu.memory_space<vmem>>, vector<8x128xf32>
    %17 = vector.broadcast %15 : vector<1x1xf32> to vector<8x128xf32>
    %18 = arith.mulf %17, %16 : vector<8x128xf32>
    %c0_7 = arith.constant 0 : index
    %c0_8 = arith.constant 0 : index
    %19 = vector.load %arg2[%c0_7, %c0_8] : memref<8x128xf32, #tpu.memory_space<vmem>>, vector<8x128xf32>
    tpu.vector_store %arg2[%c0_7, %c0_8], %18 {strides = array<i32>} : memref<8x128xf32, #tpu.memory_space<vmem>>, vector<8x128xf32>,
    %c0_9 = arith.constant 0 : index
    %c0_10 = arith.constant 0 : index
    %20 = vector.load %arg3[%c0_9, %c0_10] : memref<1x1xf32, #tpu.memory_space<vmem>>, vector<1x1xf32>
    tpu.vector_store %arg3[%c0_9, %c0_10], %15 {strides = array<i32>} : memref<1x1xf32, #tpu.memory_space<vmem>>, vector<1x1xf32>,
    return
  }
}

</mosaic_0001>

<bundles_post_ra>
// kernel: tpu_custom_call.1
= control target key start
LH: loop header
LB: loop body
LE: loop exit
PB: predicated region body
PF: predicated region fallthrough
CT: control target
= control target key end

     0   :  { %10 = vsyncpa [#allocation4], 0  ;;  %s213_s0 = inlined_call_operand.<no memory space> [shape: f32[1], index: 0, kind: input, shape index: {}]   ;;  %s214_s1 = inlined_call_operand.hbm [shape: f32[8,128], index: 1, kind: input, shape index: {}]   ;;  %s215_s2 = inlined_call_operand.hbm [shape: f32[8,128], index: 2, kind: output, shape index: {0}]   ;;  %s216_s3 = inlined_call_operand.hbm [shape: f32[1,1], index: 3, kind: output, shape index: {1}]  }
   0x1   :  { %11 = vsyncpa [#allocation5], 0 }
   0x2   :  { %12 = vsyncpa [#allocation8], 0  ;;  %s151_s12 = smov [#allocation3]   ;;  %s79_s16 = scalar_lea.hbm %s214_s1, 128 }
   0x3   :  { %s21_s13 = sshll.u32 %s151_s12, 4  ;;  %p80_p0 = scmp.ne.s32.totalorder %s214_s1, %s79_s16  ;;  %s22_s13 = int_to_ptr.vmem [resolvable:$true] %s21_s13 }
   0x4   :  { %p83_p1 = scmp.lt.u32.totalorder %s79_s16, %s214_s1 }
   0x6   :  { %p85_p2 = pnand %p83_p1, %p80_p0 }
   0x8   :  { %88 = shalt.err (!%p85_p2)
}
   0x9   :  { %s89_s21 = scalar_lea.vmem %s22_s13, 128  ;;  %p94_p4 = scmp.lt.s32.totalorder %s22_s13, %s22_s13 }
   0xa   :  { %p90_p3 = scmp.ne.s32.totalorder %s22_s13, %s89_s21  ;;  %p95_p5 = scmp.lt.s32.totalorder %s89_s21, %s89_s21 }
   0xc   :  { %p96_p6 = por %p95_p5, %p94_p4 }
   0xe   :  { %p97_p7 = pnand %p96_p6, %p90_p3 }
  0x10   :  { %100 = shalt.err (!%p97_p7)
}
  0x11   :  { %24 = dma.hbm_to_vmem [thread:$0]  %s214_s1, 128, %s22_s13, [#allocation4]  }
  0x12   :  { %145 = dma.done.wait [#allocation4], 128  }
  0x13   :  { %146 = vsyncadd [#allocation4], 4294967168  ;;  %v29_v0 = vstv %s213_s0  ;;  %s152_s26 = smov [#allocation7]   ;;  %v40_v9 = vld [vmem:[#allocation3] sm:$0xff]  ;;  %vm43_vm0 = vcmask 0   ;;  %s153_s1 = smov [#allocation6]  }
  0x14   :  { %v30_v1 = vmax.f32 %v29_v0, 0.0  ;;  %s61_s27 = sshll.u32 %s152_s26, 4  ;;  %s51_s28 = sshll.u32 %s153_s1, 4  ;;  %s62_s27 = int_to_ptr.vmem [resolvable:$true] %s61_s27  ;;  %s52_s28 = int_to_ptr.vmem [resolvable:$true] %s51_s28 }
  0x15   :  { %s101_s0 = scalar_lea.vmem %s62_s27, 16  ;;  %s105_s29 = scalar_lea.vmem %s62_s27, 32 }
  0x16   :  { %v31_v2 = vmin.f32 %v30_v1, 30.0  ;;  %p102_p8 = scmp.ne.s32.totalorder %s62_s27, %s101_s0  ;;  %p106_p9 = scmp.lt.s32.totalorder %s62_s27, %s62_s27 }
  0x17   :  { %p107_p10 = scmp.lt.s32.totalorder %s105_s29, %s101_s0 }
  0x18   :  { %v33_v3 = vmul.f32 0.033333335, %v31_v2 }
  0x19   :  { %p108_p11 = por %p107_p10, %p106_p9 }
  0x1a   :  { %v34_v4 = vsub.f32 1.0, %v33_v3 }
  0x1b   :  { %p109_p12 = pnand %p108_p11, %p102_p8 }
  0x1c   :  { %v35_v5 = vmul.f32 -5.0, %v34_v4 }
  0x1e   :  { %v36_v6 = vmul.f32 %v35_v5, %v34_v4 }
  0x20   :  { %v37_v7 = vmul.f32 1.442695, %v36_v6 }
  0x22   :  { %77 = vpow2.f32 %v37_v7 }
  0x2c   :  { %v78_v8 = vpop.eup %77 }
  0x2d   :  { %v39_v10 = vmul.f32 10.0, %v78_v8 }
  0x2f   :  { %v41_v11 = vmul.f32 %v40_v9, %v39_v10  ;;  %44 = vst.msk [vmem:[#allocation7] sm:$0x1] %vm43_vm0, %v39_v10 }
  0x30   :  { %112 = shalt.err (!%p109_p12)
}
  0x31   :  { %s113_s5 = scalar_lea.hbm %s216_s3, 16 }
  0x32   :  { %p114_p13 = scmp.ne.s32.totalorder %s216_s3, %s113_s5  ;;  %p117_p0 = scmp.lt.u32.totalorder %s113_s5, %s216_s3 }
  0x34   :  { %p119_p1 = pnand %p117_p0, %p114_p13 }
  0x36   :  { %122 = shalt.err (!%p119_p1)
}
  0x37   :  { %64 = dma.vmem_to_hbm [thread:$0]  %s62_s27, 16, %s216_s3, [#allocation8]   ;;  %42 = vst [vmem:[#allocation6] sm:$0xff] %v41_v11 }
  0x38   :  { %s123_s12 = scalar_lea.vmem %s52_s28, 128  ;;  %p128_p3 = scmp.lt.s32.totalorder %s52_s28, %s52_s28 }
  0x39   :  { %p124_p2 = scmp.ne.s32.totalorder %s52_s28, %s123_s12  ;;  %p129_p4 = scmp.lt.s32.totalorder %s123_s12, %s123_s12 }
  0x3b   :  { %p130_p5 = por %p129_p4, %p128_p3 }
  0x3d   :  { %p131_p6 = pnand %p130_p5, %p124_p2 }
  0x3f   :  { %134 = shalt.err (!%p131_p6)
}
  0x40   :  { %s135_s15 = scalar_lea.hbm %s215_s2, 128 }
  0x41   :  { %p136_p7 = scmp.ne.s32.totalorder %s215_s2, %s135_s15  ;;  %p139_p8 = scmp.lt.u32.totalorder %s135_s15, %s215_s2 }
  0x43   :  { %p141_p9 = pnand %p139_p8, %p136_p7 }
  0x45   :  { %144 = shalt.err (!%p141_p9)
}
  0x46   :  { %54 = dma.vmem_to_hbm [thread:$0]  %s52_s28, 128, %s215_s2, [#allocation5]  }
  0x47   :  { %147 = dma.done.wait [#allocation5], 128  }
  0x48   :  { %148 = vsyncadd [#allocation5], 4294967168 }
  0x49   :  { %149 = dma.done.wait [#allocation8], 16  }
  0x4a   :  { %150 = vsyncadd [#allocation8], 4294967280 }
  0x4b   :  { %71 = vsyncpa [#allocation4], 1 }
  0x4c   :  { %72 = vsyncpa [#allocation5], 1 }
  0x4d   :  { %73 = vsyncpa [#allocation8], 1 }

</bundles_post_ra>
